<compile_context>
chip_gen: v7x
topology: tpu7x:2x2x1
jax: 0.10.0
libtpu: 0.0.40
codegen_flags: <defaults>
</compile_context>

<pallas_src>
import math

import jax
import jax.numpy as jnp
from jax import lax
from jax.experimental import pallas as pl
from jax.experimental.pallas import tpu as pltpu


# "NT" contraction: contract the last axis of both operands.
#   (dim_rgb, in_dim) x (tm, in_dim)  ->  (dim_rgb, tm)
_NT_DIMS = (((1,), (1,)), ((), ()))


def _to_rgb_kernel(w_ref, b_ref, x_ref, o_ref):
    # w_ref: (dim_rgb, in_dim)  pre-scaled weight (grid-resident)
    # b_ref: (dim_rgb, 1)       pre-scaled bias   (grid-resident)
    # x_ref: (tm, in_dim)       native-layout row tile of x (contiguous HBM read)
    # o_ref: (dim_rgb, tm)      lane-dense tile of out^T
    acc = lax.dot_general(w_ref[...], x_ref[...], dimension_numbers=_NT_DIMS,
                          preferred_element_type=jnp.float32)
    acc = acc + b_ref[...].astype(jnp.float32)
    o_ref[...] = acc.astype(o_ref.dtype)


def _to_rgb_skip_kernel(w_ref, b_ref, eye_ref, x_ref, skip_ref, o_ref):
    # Same as above plus a native-layout (tm, dim_rgb) skip tile.  The skip
    # tile is relaid out to the lane-dense (dim_rgb, tm) orientation with a
    # tiny identity matmul on the otherwise-idle MXU, so neither the wrapper
    # nor the kernel pays an HBM transpose for skip.
    acc = lax.dot_general(w_ref[...], x_ref[...], dimension_numbers=_NT_DIMS,
                          preferred_element_type=jnp.float32)
    acc = acc + b_ref[...].astype(jnp.float32)
    acc = acc + lax.dot_general(eye_ref[...], skip_ref[...],
                                dimension_numbers=_NT_DIMS,
                                preferred_element_type=jnp.float32)
    o_ref[...] = acc.astype(o_ref.dtype)


def _round_up(a, b):
    return -(-a // b) * b


def mod_to_rgb(x, weight, bias, skip=None, *, lr_mul=1.0, tm=8192):
    """ModToRGB forward.

    x:      (B, N, in_dim)   channels-last input (linear acts on last axis)
    weight: (dim_rgb, in_dim)
    bias:   (dim_rgb,)
    skip:   optional (B, N, dim_rgb)
    Returns (B, N, dim_rgb).
    """
    B, N, in_dim = x.shape
    dim_rgb = weight.shape[0]
    M = B * N
    scale = (1.0 / math.sqrt(in_dim)) * lr_mul

    # Fold EqualLinear's scale into the weight and lr_mul into the bias once
    # here (tiny constant-sized XLA ops) so the kernel does no rescaling.
    w_scaled = (weight.astype(jnp.float32) * scale).astype(x.dtype)   # (dim_rgb, in_dim)
    b_col = (bias.astype(jnp.float32) * lr_mul).reshape(dim_rgb, 1)   # (dim_rgb, 1)

    # Keep x in its native row-major (M, in_dim) layout: free reshape, no HBM
    # transpose, no padding copy.  The last grid block may be partial.
    x2d = x.reshape(M, in_dim)

    # Row-tile size: multiple of 128 (or exactly M for tiny inputs), clamped so
    # v7x's two TensorCores both get work (>= 2 grid steps when possible).
    if M < 128:
        tm = M
    else:
        tm = max(128, (int(tm) // 128) * 128)
        if M > 256:
            tm = min(tm, _round_up(-(-M // 2), 128))
        tm = min(tm, _round_up(M, 128))
    grid = (pl.cdiv(M, tm),)

    const_specs = [
        pl.BlockSpec((dim_rgb, in_dim), lambda i: (0, 0)),     # weight (resident)
        pl.BlockSpec((dim_rgb, 1), lambda i: (0, 0)),          # bias   (resident)
    ]
    x_spec = pl.BlockSpec((tm, in_dim), lambda i: (i, 0))      # contiguous HBM rows
    out_spec = pl.BlockSpec((dim_rgb, tm), lambda i: (0, i))   # lane-dense out^T

    itemsize = jnp.dtype(x.dtype).itemsize
    bytes_accessed = M * in_dim * itemsize + M * dim_rgb * itemsize
    flops = 2 * M * in_dim * dim_rgb

    if skip is not None:
        skip2d = skip.reshape(M, dim_rgb)                      # native layout
        eye = jnp.eye(dim_rgb, dtype=skip.dtype)               # (dim_rgb, dim_rgb)
        kernel = _to_rgb_skip_kernel
        operands = (w_scaled, b_col, eye, x2d, skip2d)
        in_specs = const_specs + [
            pl.BlockSpec((dim_rgb, dim_rgb), lambda i: (0, 0)),  # eye (resident)
            x_spec,
            pl.BlockSpec((tm, dim_rgb), lambda i: (i, 0)),       # skip rows
        ]
        bytes_accessed += M * dim_rgb * jnp.dtype(skip.dtype).itemsize
        flops += 2 * M * dim_rgb * dim_rgb
    else:
        # Dedicated no-skip variant: no zeros placeholder, no dead HBM stream.
        kernel = _to_rgb_kernel
        operands = (w_scaled, b_col, x2d)
        in_specs = const_specs + [x_spec]

    out_t = pl.pallas_call(
        kernel,
        out_shape=jax.ShapeDtypeStruct((dim_rgb, M), x.dtype),
        grid_spec=pltpu.PrefetchScalarGridSpec(
            num_scalar_prefetch=0,
            grid=grid,
            in_specs=in_specs,
            out_specs=out_spec,
        ),
        compiler_params=pltpu.CompilerParams(
            # Shards the single grid axis across v7x's 2 TensorCores.
            dimension_semantics=("parallel",),
            # Explicit limit: v5e's scoped default is only 16 MiB; the default
            # tm=8192 f32 footprint (double-buffered, lane-padded) is ~17 MiB.
            # 40 MiB is safely below every generation's physical VMEM.
            vmem_limit_bytes=40 * 1024 * 1024,
        ),
        cost_estimate=pl.CostEstimate(
            flops=flops, transcendentals=0, bytes_accessed=bytes_accessed),
    )(*operands)

    # TODO(synk): if the downstream consumer can accept a channels-first
    # (dim_rgb, M) layout, return out_t directly and save this extra XLA
    # transpose (a read+write of the 3*M output stream).
    return out_t.T.reshape(B, N, dim_rgb)


if __name__ == "__main__":
    # Small shapes consistent with the module's forward:
    # batch=2, 64 points, in_dim=32, dim_rgb=3.
    B, N, in_dim, dim_rgb = 2, 64, 32, 3
    lr_mul = 1.0

    key = jax.random.PRNGKey(0)
    kx, kw, ks = jax.random.split(key, 3)

    x = jax.random.normal(kx, (B, N, in_dim), dtype=jnp.float32)
    skip = jax.random.normal(ks, (B, N, dim_rgb), dtype=jnp.float32)

    # Deterministic parameter init mirroring EqualLinear.__init__:
    #   weight = randn(out_dim, in_dim) / lr_mul ; bias = zeros(out_dim)
    weight = jax.random.normal(kw, (dim_rgb, in_dim), dtype=jnp.float32) / lr_mul
    bias = jnp.zeros((dim_rgb,), dtype=jnp.float32)

    out = jax.block_until_ready(mod_to_rgb(x, weight, bias, skip, lr_mul=lr_mul))
    out_noskip = jax.block_until_ready(mod_to_rgb(x, weight, bias, None, lr_mul=lr_mul))

    # Pure-JAX reference for sanity.
    scale = (1.0 / math.sqrt(in_dim)) * lr_mul
    ref = jnp.einsum("bni,oi->bno", x, weight * scale) + bias * lr_mul
    assert out.shape == (B, N, dim_rgb)
    assert out_noskip.shape == (B, N, dim_rgb)
    assert jnp.allclose(out_noskip, ref, atol=1e-4, rtol=1e-4)
    assert jnp.allclose(out, ref + skip, atol=1e-4, rtol=1e-4)

    print("KERNEL_OK")
</pallas_src>

<mosaic_0001>
module attributes {stable_mosaic.version = 11 : i64} {
  func.func @_to_rgb_skip_kernel(%arg0: i32, %arg1: memref<3x32xf32, #tpu.memory_space<vmem>>, %arg2: memref<3x1xf32, #tpu.memory_space<vmem>>, %arg3: memref<3x3xf32, #tpu.memory_space<vmem>>, %arg4: memref<128x32xf32, #tpu.memory_space<vmem>>, %arg5: memref<128x3xf32, #tpu.memory_space<vmem>>, %arg6: memref<3x128xf32, #tpu.memory_space<vmem>>) attributes {dimension_semantics = [#tpu.dimension_semantics<parallel>], iteration_bounds = array<i64: 1>, scalar_prefetch = 0 : i64, scratch_operands = 0 : i64, tpu.core_type = #tpu.core_type<tc>, window_params = [{pipeline_mode = #tpu.pipeline_mode<synchronous>, transform_indices = @transform_0, window_bounds = array<i64: 3, 32>}, {pipeline_mode = #tpu.pipeline_mode<synchronous>, transform_indices = @transform_1, window_bounds = array<i64: 3, 1>}, {pipeline_mode = #tpu.pipeline_mode<synchronous>, transform_indices = @transform_2, window_bounds = array<i64: 3, 3>}, {transform_indices = @transform_3, window_bounds = array<i64: 128, 32>}, {transform_indices = @transform_4, window_bounds = array<i64: 128, 3>}, {transform_indices = @transform_5, window_bounds = array<i64: 3, 128>}]} {
    %c0 = arith.constant 0 : index
    %c0_0 = arith.constant 0 : index
    %0 = vector.load %arg1[%c0, %c0_0] : memref<3x32xf32, #tpu.memory_space<vmem>>, vector<3x32xf32>
    %c0_1 = arith.constant 0 : index
    %c0_2 = arith.constant 0 : index
    %1 = vector.load %arg4[%c0_1, %c0_2] : memref<128x32xf32, #tpu.memory_space<vmem>>, vector<128x32xf32>
    %cst = arith.constant dense<0.000000e+00> : vector<3x128xf32>
    %2 = tpu.matmul %0, %1, %cst {dimension_numbers = #tpu.dot_dimension_numbers<[1], [1], [0], [0], [0, 0, 1, 0], [], []>} : vector<3x32xf32>, vector<128x32xf32>, vector<3x128xf32> -> vector<3x128xf32>
    %c0_3 = arith.constant 0 : index
    %c0_4 = arith.constant 0 : index
    %3 = vector.load %arg2[%c0_3, %c0_4] : memref<3x1xf32, #tpu.memory_space<vmem>>, vector<3x1xf32>
    %4 = vector.broadcast %3 : vector<3x1xf32> to vector<3x128xf32>
    %5 = arith.addf %2, %4 : vector<3x128xf32>
    %c0_5 = arith.constant 0 : index
    %c0_6 = arith.constant 0 : index
    %6 = vector.load %arg3[%c0_5, %c0_6] : memref<3x3xf32, #tpu.memory_space<vmem>>, vector<3x3xf32>
    %c0_7 = arith.constant 0 : index
    %c0_8 = arith.constant 0 : index
    %7 = vector.load %arg5[%c0_7, %c0_8] : memref<128x3xf32, #tpu.memory_space<vmem>>, vector<128x3xf32>
    %cst_9 = arith.constant dense<0.000000e+00> : vector<3x128xf32>
    %8 = tpu.matmul %6, %7, %cst_9 {dimension_numbers = #tpu.dot_dimension_numbers<[1], [1], [0], [0], [0, 0, 1, 0], [], []>} : vector<3x3xf32>, vector<128x3xf32>, vector<3x128xf32> -> vector<3x128xf32>
    %9 = arith.addf %5, %8 : vector<3x128xf32>
    %c0_10 = arith.constant 0 : index
    %c0_11 = arith.constant 0 : index
    %10 = vector.load %arg6[%c0_10, %c0_11] : memref<3x128xf32, #tpu.memory_space<vmem>>, vector<3x128xf32>
    tpu.vector_store %arg6[%c0_10, %c0_11], %9 {strides = array<i32>} : memref<3x128xf32, #tpu.memory_space<vmem>>, vector<3x128xf32>,
    return
  }
  func.func @transform_0(%arg0: i32) -> (i32, i32) {
    %c0_i32 = arith.constant 0 : i32
    %c0_i32_0 = arith.constant 0 : i32
    %c0_i32_1 = arith.constant 0 : i32
    return %c0_i32, %c0_i32_0 : i32, i32
  }
  func.func @transform_1(%arg0: i32) -> (i32, i32) {
    %c0_i32 = arith.constant 0 : i32
    %c0_i32_0 = arith.constant 0 : i32
    %c0_i32_1 = arith.constant 0 : i32
    return %c0_i32, %c0_i32_0 : i32, i32
  }
  func.func @transform_2(%arg0: i32) -> (i32, i32) {
    %c0_i32 = arith.constant 0 : i32
    %c0_i32_0 = arith.constant 0 : i32
    %c0_i32_1 = arith.constant 0 : i32
    return %c0_i32, %c0_i32_0 : i32, i32
  }
  func.func @transform_3(%arg0: i32) -> (i32, i32) {
    %c0_i32 = arith.constant 0 : i32
    %c0_i32_0 = arith.constant 0 : i32
    return %arg0, %c0_i32 : i32, i32
  }
  func.func @transform_4(%arg0: i32) -> (i32, i32) {
    %c0_i32 = arith.constant 0 : i32
    %c0_i32_0 = arith.constant 0 : i32
    return %arg0, %c0_i32 : i32, i32
  }
  func.func @transform_5(%arg0: i32) -> (i32, i32) {
    %c0_i32 = arith.constant 0 : i32
    %c0_i32_0 = arith.constant 0 : i32
    return %c0_i32, %arg0 : i32, i32
  }
}

</mosaic_0001>

<bundles_post_ra>
// kernel: tpu_custom_call.1
= control target key start
LH: loop header
LB: loop body
LE: loop exit
PB: predicated region body
PF: predicated region fallthrough
CT: control target
= control target key end

     0   :  { %vm44_vm0 = vcmask 261120   ;;  %vm183_vm1 = vcmask 23552   ;;  %v555_v3 = vmov 0.0|0.0   ;;  %vm556_vm4 = vmmov 0   ;;  %s769_s0 = inlined_call_operand.vmem [shape: f32[3,32], index: 0, kind: input, shape index: {}]   ;;  %s770_s1 = inlined_call_operand.vmem [shape: f32[3,1], index: 1, kind: input, shape index: {}]   ;;  %s771_s2 = inlined_call_operand.vmem [shape: f32[3,3], index: 2, kind: input, shape index: {}]   ;;  %s772_s3 = inlined_call_operand.vmem [shape: f32[128,32], index: 3, kind: input, shape index: {}]   ;;  %s773_s4 = inlined_call_operand.vmem [shape: f32[128,3], index: 4, kind: input, shape index: {}]   ;;  %s774_s5 = inlined_call_operand.hbm [shape: f32[3,128], index: 5, kind: output, shape index: {}]  }
   0x1   :  { %v22_v0 = vld [vmem:[%s772_s3] sm:$0xff]  ;;  %v23_v1 = vld [vmem:[%s772_s3 + $0x8] sm:$0xff]  ;;  %459 = vmatprep.subr.bf16.mxu1 %v555_v3  ;;  %vm602_vm2 = vmpackc.low %vm44_vm0, %vm44_vm0  ;;  %491 = vmatprep.subr.bf16.mxu0 %v555_v3  ;;  %v557_v9 = vmov 0.0   ;;  %v558_v10 = vmov 0  }
   0x2   :  { %v167_v2 = vld [vmem:[%s773_s4] sm:$0xff]  ;;  %v460_v4 = vpack.c.bf16 %v23_v1, %v22_v0  ;;  %v168_v6 = vld [vmem:[%s773_s4 + $0x8] sm:$0xff]  ;;  %vm612_vm3 = vmpackc.low %vm183_vm1, %vm183_vm1  ;;  %421 = vmatprep.mubr.msk.f32.mxu1 %vm556_vm4, %v557_v9  ;;  %456 = vmatprep.mubr.msk.f32.mxu0 %vm556_vm4, %v557_v9 }
   0x3   :  { %v492_v7 = vpack.c.bf16 %v168_v6, %v167_v2  ;;  %530 = vset.pattern.permute.xlu0 %v558_v10  ;;  %v24_v11 = vld [vmem:[%s772_s3 + $0x10] sm:$0xff]  ;;  %v25_v12 = vld [vmem:[%s772_s3 + $0x18] sm:$0xff]  ;;  %v26_v17 = vld [vmem:[%s772_s3 + $0x20] sm:$0xff] }
   0x4   :  { %462 = vmatpush3.bf16.xpose.msk.msra.mxu1 %vm602_vm2, %v460_v4  ;;  %v169_v13 = vld [vmem:[%s773_s4 + $0x10] sm:$0xff]  ;;  %v170_v14 = vld [vmem:[%s773_s4 + $0x18] sm:$0xff]  ;;  %v464_v15 = vpack.c.bf16 %v25_v12, %v24_v11  ;;  %v27_v18 = vld [vmem:[%s772_s3 + $0x28] sm:$0xff] }
   0x5   :  { %494 = vmatpush3.bf16.xpose.msk.msra.mxu0 %vm612_vm3, %v492_v7  ;;  %463 = vmatprep.subr.bf16.mxu1 %v555_v3  ;;  %v496_v16 = vpack.c.bf16 %v170_v14, %v169_v13  ;;  %v38_v19 = vld [vmem:[%s770_s1] sm:$0x7] }
   0x6   :  { %495 = vmatprep.subr.bf16.mxu0 %v555_v3 }
   0xc   :  { %466 = vmatpush3.bf16.xpose.msk.msra.mxu1 %vm602_vm2, %v464_v15 }
   0xd   :  { %498 = vmatpush3.bf16.xpose.msk.msra.mxu0 %vm612_vm3, %v496_v16  ;;  %467 = vmatprep.subr.bf16.mxu1 %v555_v3 }
   0xe   :  { %10 = vsyncpa [#allocation3], 0  ;;  %499 = vmatprep.subr.bf16.mxu0 %v555_v3  ;;  %v171_v20 = vld [vmem:[%s773_s4 + $0x20] sm:$0xff]  ;;  %v172_v21 = vld [vmem:[%s773_s4 + $0x28] sm:$0xff]  ;;  %41 = vperm.xlu0 %530, %v38_v19   ;;  %v468_v22 = vpack.c.bf16 %v27_v18, %v26_v17 }
   0xf   :  { %v500_v23 = vpack.c.bf16 %v172_v21, %v171_v20  ;;  %v28_v24 = vld [vmem:[%s772_s3 + $0x30] sm:$0xff]  ;;  %v29_v25 = vld [vmem:[%s772_s3 + $0x38] sm:$0xff]  ;;  %v30_v30 = vld [vmem:[%s772_s3 + $0x40] sm:$0xff] }
  0x10   :  { %v173_v26 = vld [vmem:[%s773_s4 + $0x30] sm:$0xff]  ;;  %v174_v27 = vld [vmem:[%s773_s4 + $0x38] sm:$0xff]  ;;  %v472_v28 = vpack.c.bf16 %v29_v25, %v28_v24  ;;  %v31_v31 = vld [vmem:[%s772_s3 + $0x48] sm:$0xff] }
  0x11   :  { %v504_v29 = vpack.c.bf16 %v174_v27, %v173_v26  ;;  %v175_v32 = vld [vmem:[%s773_s4 + $0x40] sm:$0xff]  ;;  %v176_v33 = vld [vmem:[%s773_s4 + $0x48] sm:$0xff]  ;;  %v476_v34 = vpack.c.bf16 %v31_v31, %v30_v30  ;;  %v32_v36 = vld [vmem:[%s772_s3 + $0x50] sm:$0xff] }
  0x12   :  { %v508_v35 = vpack.c.bf16 %v176_v33, %v175_v32  ;;  %v33_v37 = vld [vmem:[%s772_s3 + $0x58] sm:$0xff]  ;;  %v177_v38 = vld [vmem:[%s773_s4 + $0x50] sm:$0xff]  ;;  %v34_v42 = vld [vmem:[%s772_s3 + $0x60] sm:$0xff] }
  0x13   :  { %v178_v39 = vld [vmem:[%s773_s4 + $0x58] sm:$0xff]  ;;  %v480_v40 = vpack.c.bf16 %v33_v37, %v32_v36  ;;  %v35_v43 = vld [vmem:[%s772_s3 + $0x68] sm:$0xff]  ;;  %v179_v44 = vld [vmem:[%s773_s4 + $0x60] sm:$0xff] }
  0x14   :  { %470 = vmatpush3.bf16.xpose.msk.msra.mxu1 %vm602_vm2, %v468_v22  ;;  %v512_v41 = vpack.c.bf16 %v178_v39, %v177_v38  ;;  %v180_v45 = vld [vmem:[%s773_s4 + $0x68] sm:$0xff]  ;;  %v484_v46 = vpack.c.bf16 %v35_v43, %v34_v42  ;;  %v36_v48 = vld [vmem:[%s772_s3 + $0x70] sm:$0xff]  ;;  %v37_v49 = vld [vmem:[%s772_s3 + $0x78] sm:$0xff] }
  0x15   :  { %502 = vmatpush3.bf16.xpose.msk.msra.mxu0 %vm612_vm3, %v500_v23  ;;  %471 = vmatprep.subr.bf16.mxu1 %v555_v3  ;;  %v516_v47 = vpack.c.bf16 %v180_v45, %v179_v44  ;;  %v181_v50 = vld [vmem:[%s773_s4 + $0x70] sm:$0xff]  ;;  %v182_v51 = vld [vmem:[%s773_s4 + $0x78] sm:$0xff]  ;;  %v488_v52 = vpack.c.bf16 %v37_v49, %v36_v48  ;;  %v21_v54 = vld [vmem:[%s769_s0] sm:$0x7]  ;;  %s559_s4 = smov [#allocation2]  }
  0x16   :  { %503 = vmatprep.subr.bf16.mxu0 %v555_v3  ;;  %v520_v53 = vpack.c.bf16 %v182_v51, %v181_v50  ;;  %v166_v55 = vld [vmem:[%s771_s2] sm:$0x7]  ;;  %s313_s10 = sshll.u32 %s559_s4, 4  ;;  %s314_s10 = int_to_ptr.vmem [resolvable:$true] %s313_s10 }
  0x17   :  { %s531_s0 = scalar_lea.vmem %s314_s10, 64  ;;  %p536_p1 = scmp.lt.s32.totalorder %s314_s10, %s314_s10 }
  0x18   :  { %p532_p0 = scmp.ne.s32.totalorder %s314_s10, %s531_s0  ;;  %p537_p2 = scmp.lt.s32.totalorder %s531_s0, %s531_s0 }
  0x1a   :  { %p538_p3 = por %p537_p2, %p536_p1 }
  0x1c   :  { %474 = vmatpush3.bf16.xpose.msk.msra.mxu1 %vm602_vm2, %v472_v28  ;;  %p539_p4 = pnand %p538_p3, %p532_p0 }
  0x1d   :  { %506 = vmatpush3.bf16.xpose.msk.msra.mxu0 %vm612_vm3, %v504_v29  ;;  %475 = vmatprep.subr.bf16.mxu1 %v555_v3 }
  0x1e   :  { %507 = vmatprep.subr.bf16.mxu0 %v555_v3 }
  0x24   :  { %478 = vmatpush3.bf16.xpose.msk.msra.mxu1 %vm602_vm2, %v476_v34 }
  0x25   :  { %510 = vmatpush3.bf16.xpose.msk.msra.mxu0 %vm612_vm3, %v508_v35  ;;  %479 = vmatprep.subr.bf16.mxu1 %v555_v3 }
  0x26   :  { %511 = vmatprep.subr.bf16.mxu0 %v555_v3 }
  0x2c   :  { %482 = vmatpush3.bf16.xpose.msk.msra.mxu1 %vm602_vm2, %v480_v40 }
  0x2d   :  { %514 = vmatpush3.bf16.xpose.msk.msra.mxu0 %vm612_vm3, %v512_v41  ;;  %483 = vmatprep.subr.bf16.mxu1 %v555_v3 }
  0x2e   :  { %515 = vmatprep.subr.bf16.mxu0 %v555_v3 }
  0x34   :  { %486 = vmatpush3.bf16.xpose.msk.msra.mxu1 %vm602_vm2, %v484_v46 }
  0x35   :  { %518 = vmatpush3.bf16.xpose.msk.msra.mxu0 %vm612_vm3, %v516_v47  ;;  %487 = vmatprep.subr.bf16.mxu1 %v555_v3 }
  0x36   :  { %519 = vmatprep.subr.bf16.mxu0 %v555_v3 }
  0x3c   :  { %490 = vmatpush3.bf16.xpose.msk.msra.mxu1 %vm602_vm2, %v488_v52 }
  0x3d   :  { %522 = vmatpush3.bf16.xpose.msk.msra.mxu0 %vm612_vm3, %v520_v53 }
  0x43   :  { %422 = vmatmul.mubr.msk.f32.vlgmr.msra.gmra.mrb[0].mxu1 %vm44_vm0, %v21_v54 }
  0x44   :  { %457 = vmatmul.mubr.msk.f32.vlgmr.msra.gmra.mrb[0].mxu0 %vm183_vm1, %v166_v55 }
  0x8d   :  { %v42_v56 = vpop.permute.xlu0 %41 }
 0x116   :  { %v162_v57 = vpop.f32.mrb[0].mxu1 }
 0x117   :  { %v163_v58 = vadd.f32 %v162_v57, %v42_v56  ;;  %v423_v59 = vpop.f32.mrb[1].mxu1  ;;  %v301_v60 = vpop.f32.mrb[0].mxu0 }
 0x118   :  { %v458_v61 = vpop.f32.mrb[1].mxu0 }
 0x119   :  { %v305_v62 = vadd.f32 %v301_v60, %v163_v58 }
 0x11b   :  { %306 = vst [vmem:[#allocation2] sm:$0x7] %v305_v62 }
 0x11c   :  { %542 = shalt.err (!%p539_p4)
}
 0x11d   :  { %s543_s12 = scalar_lea.hbm %s774_s5, 64 }
 0x11e   :  { %p544_p5 = scmp.ne.s32.totalorder %s774_s5, %s543_s12  ;;  %p547_p6 = scmp.lt.u32.totalorder %s543_s12, %s774_s5 }
 0x120   :  { %p549_p7 = pnand %p547_p6, %p544_p5 }
 0x122   :  { %552 = shalt.err (!%p549_p7)
}
 0x123   :  { %316 = dma.vmem_to_hbm [thread:$0]  %s314_s10, 64, %s774_s5, [#allocation3]  }
 0x124   :  { %553 = dma.done.wait [#allocation3], 64  }
 0x125   :  { %554 = vsyncadd [#allocation3], 4294967232 }
 0x126   :  { %320 = vsyncpa [#allocation3], 1 }

</bundles_post_ra>
